<compile_context>
chip_gen: v6e
topology: v6e:2x2x1
jax: 0.10.0
libtpu: 0.0.40
codegen_flags: <defaults>
</compile_context>

<pallas_src>
import math

import jax
import jax.numpy as jnp
from jax.experimental import pallas as pl
from jax.experimental.pallas import tpu as pltpu


# ----------------------------------------------------------------------------
# Optional materializing path: one direct HBM -> HBM DMA (no VMEM staging).
# ----------------------------------------------------------------------------
def _hbm_copy_kernel(x_hbm, o_hbm, sem):
    # Single whole-buffer DMA: HBM -> HBM.  Shape/dtype agnostic, no tiling
    # constraints, no VMEM footprint beyond the DMA descriptor.
    cp = pltpu.make_async_copy(x_hbm, o_hbm, sem)
    cp.start()
    cp.wait()


def _pallas_materialize(x: jax.Array) -> jax.Array:
    """Return a freshly materialized copy of `x` via a single HBM->HBM DMA."""
    total = int(math.prod(x.shape))
    if total == 0:
        return x
    itemsize = jnp.dtype(x.dtype).itemsize

    return pl.pallas_call(
        _hbm_copy_kernel,
        out_shape=jax.ShapeDtypeStruct(x.shape, x.dtype),
        in_specs=[pl.BlockSpec(memory_space=pl.ANY)],
        out_specs=pl.BlockSpec(memory_space=pl.ANY),
        scratch_shapes=[pltpu.SemaphoreType.DMA(())],
        cost_estimate=pl.CostEstimate(
            flops=0,
            transcendentals=0,
            bytes_accessed=2 * total * itemsize,
        ),
    )(x)


# ----------------------------------------------------------------------------
# Flatten module (mirrors the PyTorch forward's shape arithmetic exactly).
# ----------------------------------------------------------------------------
class Flatten:
    def __init__(
        self,
        start_dim: int = 1,
        end_dim: int = -1,
        force_materialize: bool = False,
    ) -> None:
        self.start_dim = start_dim
        self.end_dim = end_dim
        # Only used for benchmarking / forcing a fresh buffer; the default
        # (and recommended) path is the metadata-only reshape below.
        self.force_materialize = force_materialize

    def __call__(self, x: jax.Array) -> jax.Array:
        shape = x.shape
        # Exact replication of the PyTorch forward's shape arithmetic:
        start = shape[: self.start_dim]
        end = shape[self.end_dim :][1:]
        target_shape_spec = (*start, -1, *end)

        # FAST PATH (default): metadata-only reshape — zero data movement.
        flat = jnp.reshape(x, target_shape_spec)

        if not self.force_materialize:
            return flat

        # Optional: force a real copy via a single HBM->HBM DMA kernel.
        return _pallas_materialize(flat)


# ----------------------------------------------------------------------------
# Demo / self-test
# ----------------------------------------------------------------------------
if __name__ == "__main__":
    key = jax.random.PRNGKey(0)
    # NCHW input, small shapes: batch=2, channels=4, spatial=16x16.
    x = jax.random.normal(key, (2, 4, 16, 16), dtype=jnp.float32)
    y_ref = jnp.reshape(x, (x.shape[0], -1))

    # Default Flatten(start_dim=1): metadata-only path, (2,4,16,16) -> (2,1024).
    y = jax.block_until_ready(Flatten(start_dim=1, end_dim=-1)(x))
    assert y.shape == (2, 4 * 16 * 16), y.shape
    assert y.dtype == x.dtype
    assert bool(jnp.array_equal(y, y_ref))

    # Forced-materialize path: exercises the Pallas HBM->HBM DMA kernel once.
    y_mat = jax.block_until_ready(
        Flatten(start_dim=1, end_dim=-1, force_materialize=True)(x)
    )
    assert y_mat.shape == (2, 4 * 16 * 16)
    assert y_mat.dtype == x.dtype
    assert bool(jnp.array_equal(y_mat, y_ref))

    # Full flatten (start_dim=0) through the DMA path.
    y0 = jax.block_until_ready(
        Flatten(start_dim=0, end_dim=-1, force_materialize=True)(x)
    )
    assert y0.shape == (2 * 4 * 16 * 16,)
    assert bool(jnp.array_equal(y0, jnp.reshape(x, (-1,))))

    # Awkward (non-128-divisible) element count: HBM->HBM DMA has no tiling
    # constraints, so no special-case path is needed.
    x_odd = jax.random.normal(key, (3, 5, 7), dtype=jnp.float32)
    y_odd = jax.block_until_ready(
        Flatten(start_dim=1, end_dim=-1, force_materialize=True)(x_odd)
    )
    assert y_odd.shape == (3, 35)
    assert bool(jnp.array_equal(y_odd, jnp.reshape(x_odd, (3, -1))))

    print("KERNEL_OK")
</pallas_src>

<mosaic_0001>
module attributes {stable_mosaic.version = 11 : i64} {
  func.func @_hbm_copy_kernel(%arg0: memref<2x1024xf32, #tpu.memory_space<any>>, %arg1: memref<2x1024xf32, #tpu.memory_space<any>>, %arg2: memref<!tpu.dma_semaphore, #tpu.memory_space<semaphore_mem>>) attributes {dimension_semantics = [], scalar_prefetch = 0 : i64, scratch_operands = 1 : i64, tpu.core_type = #tpu.core_type<tc>} {
    tpu.enqueue_dma source(%arg0 : memref<2x1024xf32, #tpu.memory_space<any>>) target(%arg1 : memref<2x1024xf32, #tpu.memory_space<any>>) target_semaphore(%arg2 : memref<!tpu.dma_semaphore, #tpu.memory_space<semaphore_mem>>)
    tpu.wait_dma2 semaphore(%arg2 : memref<!tpu.dma_semaphore, #tpu.memory_space<semaphore_mem>>) src(%arg0 : memref<2x1024xf32, #tpu.memory_space<any>>) dst(%arg1 : memref<2x1024xf32, #tpu.memory_space<any>>)
    return
  }
}

</mosaic_0001>

<bundles_post_ra>
// kernel: tpu_custom_call.1
= control target key start
LH: loop header
LB: loop body
LE: loop exit
PB: predicated region body
PF: predicated region fallthrough
CT: control target
= control target key end

     0   :  { %s29_s6 = smov [#allocation2]   ;;  %s30_s7 = smov 131072   ;;  %s48_s0 = inlined_call_operand.hbm [shape: f32[2,1024], index: 0, kind: input, shape index: {}]   ;;  %s49_s1 = inlined_call_operand.hbm [shape: f32[2,1024], index: 1, kind: output, shape index: {}]  }
   0x1   :  { %s31_s8 = smov 0  }
   0x2   :  { %12 = dma.general %s48_s0, 256, %s49_s1, %s29_s6, %s30_s7, [#allocation4], %s31_s8, 0  }
   0x3   :  { %27 = dma.done.wait [#allocation2], 256 }
   0x4   :  { %28 = vsyncadd [#allocation2], 4294967040 }
   0x5   :  { %17 = vsyncmov [#allocation2] }
   0x8   :  { %s18_s13 = vpop.sfrf %17 }
   0x9   :  { %p23_p0 = scmp.ne.s32.totalorder %s18_s13, 0 }
   0xb   :  { %22 = shalt.err (%p23_p0)  }

</bundles_post_ra>
